<compile_context>
chip_gen: v7x
topology: tpu7x:2x2x1
jax: 0.10.0
libtpu: 0.0.40
codegen_flags: <defaults>
</compile_context>

<pallas_src>
import functools
import math

import jax
import jax.numpy as jnp
from jax.experimental import pallas as pl
from jax.experimental.pallas import tpu as pltpu


def mha_e1_kernel(p_ref, x_ref, o_ref, *, scale):
    """MultiheadAttention forward specialised to embed_dim=1, num_heads=1.

    p_ref : SMEM (8,) f32  -- packed [wq, wk, wv, wo, bq, bk, bv, bo]
    x_ref : VMEM (L, N) f32 -- sequence on sublanes, batch on lanes
    o_ref : VMEM (L, N) f32
    """
    wq, wk, wv, wo = p_ref[0], p_ref[1], p_ref[2], p_ref[3]
    bq, bk, bv, bo = p_ref[4], p_ref[5], p_ref[6], p_ref[7]

    x = x_ref[...]                                   # (L, N)

    # in-projection: pure VPU scalar-broadcast multiply/add (E == 1)
    q = (x * wq + bq) * scale                        # (L, N)
    k = x * wk + bk                                  # (L, N)
    v = x * wv + bv                                  # (L, N)

    # scores s[i, j, n] = q[i, n] * k[j, n]: outer product via broadcasting
    s = q[:, None, :] * k[None, :, :]                # (L, L, N)

    # softmax over the key axis j (axis=1), numerically stabilised
    s = s - jnp.max(s, axis=1, keepdims=True)
    p = jnp.exp(s)
    p = p / jnp.sum(p, axis=1, keepdims=True)

    # attention output o[i, n] = sum_j p[i, j, n] * v[j, n]
    attn = jnp.sum(p * v[None, :, :], axis=1)        # (L, N)

    # out-projection (scalar weight/bias)
    o_ref[...] = (attn * wo + bo).astype(o_ref.dtype)


def multihead_attention_pallas(x_lne, in_proj_w, in_proj_b,
                               out_proj_w, out_proj_b, num_heads):
    """x_lne: (L, N, E) in the PyTorch nn.MultiheadAttention convention."""
    L, N, E = x_lne.shape
    assert E == 1 and num_heads == 1, "kernel specialised for embed_dim=1, num_heads=1"
    head_dim = E // num_heads
    scale = 1.0 / math.sqrt(head_dim)

    # Pack the 8 scalar parameters into one SMEM vector:
    # [wq, wk, wv, wo, bq, bk, bv, bo]
    params = jnp.concatenate([
        in_proj_w.reshape(-1),     # wq, wk, wv
        out_proj_w.reshape(-1),    # wo
        in_proj_b.reshape(-1),     # bq, bk, bv
        out_proj_b.reshape(-1),    # bo
    ]).astype(jnp.float32)

    # Drop the trailing E=1 dim -- layout-preserving, no transpose needed.
    x2d = x_lne.reshape(L, N)

    y2d = pl.pallas_call(
        functools.partial(mha_e1_kernel, scale=scale),
        out_shape=jax.ShapeDtypeStruct((L, N), x2d.dtype),
        in_specs=[
            pl.BlockSpec(memory_space=pltpu.MemorySpace.SMEM),   # packed params
            pl.BlockSpec(memory_space=pltpu.MemorySpace.VMEM),   # x (whole array)
        ],
        out_specs=pl.BlockSpec(memory_space=pltpu.MemorySpace.VMEM),
    )(params, x2d)

    return y2d.reshape(L, N, E)


def multihead_attention_ref(x_lne, in_proj_w, in_proj_b,
                            out_proj_w, out_proj_b, num_heads):
    """Pure-JAX reference mirroring torch.nn.MultiheadAttention forward."""
    L, N, E = x_lne.shape
    head_dim = E // num_heads
    qkv = jnp.einsum('lne,fe->lnf', x_lne, in_proj_w) + in_proj_b
    q, k, v = jnp.split(qkv, 3, axis=-1)                           # (L, N, E)

    def reshape_heads(t):
        return t.reshape(L, N * num_heads, head_dim).transpose(1, 0, 2)

    q = reshape_heads(q) / math.sqrt(head_dim)
    k = reshape_heads(k)
    v = reshape_heads(v)
    s = jnp.einsum('bld,bmd->blm', q, k)
    p = jax.nn.softmax(s, axis=-1)
    o = jnp.einsum('blm,bmd->bld', p, v)                           # (N*H, L, Dh)
    o = o.transpose(1, 0, 2).reshape(L, N, E)
    return jnp.einsum('lne,fe->lnf', o, out_proj_w) + out_proj_b


if __name__ == "__main__":
    # Module config (from the PyTorch source): embed_dim=1, num_heads=1.
    embed_dim = 1
    num_heads = 1
    # Small shapes consistent with nn.MultiheadAttention's (L, N, E) input.
    L, N = 8, 2

    key = jax.random.PRNGKey(0)
    k1, k2, k3, k4, k5 = jax.random.split(key, 5)

    x = jax.random.normal(k1, (L, N, embed_dim), dtype=jnp.float32)

    in_proj_weight = jax.random.normal(
        k2, (3 * embed_dim, embed_dim), dtype=jnp.float32) / math.sqrt(embed_dim)
    in_proj_bias = jax.random.normal(k3, (3 * embed_dim,), dtype=jnp.float32) * 0.1
    out_proj_weight = jax.random.normal(
        k4, (embed_dim, embed_dim), dtype=jnp.float32) / math.sqrt(embed_dim)
    out_proj_bias = jax.random.normal(k5, (embed_dim,), dtype=jnp.float32) * 0.1

    out = multihead_attention_pallas(
        x, in_proj_weight, in_proj_bias, out_proj_weight, out_proj_bias, num_heads)
    out = jax.block_until_ready(out)

    ref = multihead_attention_ref(
        x, in_proj_weight, in_proj_bias, out_proj_weight, out_proj_bias, num_heads)

    assert out.shape == (L, N, embed_dim)
    assert jnp.allclose(out, ref, atol=1e-5, rtol=1e-5), "mismatch vs reference"

    print("KERNEL_OK")
</pallas_src>

<mosaic_0001>
module attributes {stable_mosaic.version = 11 : i64} {
  func.func @mha_e1_kernel(%arg0: memref<8xf32, #tpu.memory_space<smem>>, %arg1: memref<8x2xf32, #tpu.memory_space<vmem>>, %arg2: memref<8x2xf32, #tpu.memory_space<vmem>>) attributes {dimension_semantics = [], scalar_prefetch = 0 : i64, scratch_operands = 0 : i64, tpu.core_type = #tpu.core_type<tc>} {
    %c0 = arith.constant 0 : index
    %0 = memref.load %arg0[%c0] : memref<8xf32, #tpu.memory_space<smem>>
    %c1 = arith.constant 1 : index
    %1 = memref.load %arg0[%c1] : memref<8xf32, #tpu.memory_space<smem>>
    %c2 = arith.constant 2 : index
    %2 = memref.load %arg0[%c2] : memref<8xf32, #tpu.memory_space<smem>>
    %c3 = arith.constant 3 : index
    %3 = memref.load %arg0[%c3] : memref<8xf32, #tpu.memory_space<smem>>
    %c4 = arith.constant 4 : index
    %4 = memref.load %arg0[%c4] : memref<8xf32, #tpu.memory_space<smem>>
    %c5 = arith.constant 5 : index
    %5 = memref.load %arg0[%c5] : memref<8xf32, #tpu.memory_space<smem>>
    %c6 = arith.constant 6 : index
    %6 = memref.load %arg0[%c6] : memref<8xf32, #tpu.memory_space<smem>>
    %c7 = arith.constant 7 : index
    %7 = memref.load %arg0[%c7] : memref<8xf32, #tpu.memory_space<smem>>
    %c0_0 = arith.constant 0 : index
    %c0_1 = arith.constant 0 : index
    %8 = vector.load %arg1[%c0_0, %c0_1] : memref<8x2xf32, #tpu.memory_space<vmem>>, vector<8x2xf32>
    %9 = vector.broadcast %0 : f32 to vector<8x2xf32>
    %10 = arith.mulf %8, %9 : vector<8x2xf32>
    %11 = vector.broadcast %4 : f32 to vector<8x2xf32>
    %12 = arith.addf %10, %11 : vector<8x2xf32>
    %cst = arith.constant 1.000000e+00 : f32
    %13 = vector.broadcast %cst : f32 to vector<8x2xf32>
    %14 = arith.mulf %12, %13 : vector<8x2xf32>
    %15 = vector.broadcast %1 : f32 to vector<8x2xf32>
    %16 = arith.mulf %8, %15 : vector<8x2xf32>
    %17 = vector.broadcast %5 : f32 to vector<8x2xf32>
    %18 = arith.addf %16, %17 : vector<8x2xf32>
    %19 = vector.broadcast %2 : f32 to vector<8x2xf32>
    %20 = arith.mulf %8, %19 : vector<8x2xf32>
    %21 = vector.broadcast %6 : f32 to vector<8x2xf32>
    %22 = arith.addf %20, %21 : vector<8x2xf32>
    %23 = vector.shape_cast %14 : vector<8x2xf32> to vector<8x1x2xf32>
    %24 = vector.shape_cast %18 : vector<8x2xf32> to vector<1x8x2xf32>
    %25 = vector.broadcast %23 : vector<8x1x2xf32> to vector<8x8x2xf32>
    %26 = vector.broadcast %24 : vector<1x8x2xf32> to vector<8x8x2xf32>
    %27 = arith.mulf %25, %26 : vector<8x8x2xf32>
    %cst_2 = arith.constant dense<0xFF800000> : vector<8x2xf32>
    %28 = vector.multi_reduction <maximumf>, %27, %cst_2 [1] : vector<8x8x2xf32> to vector<8x2xf32>
    %29 = vector.shape_cast %28 : vector<8x2xf32> to vector<8x1x2xf32>
    %30 = vector.broadcast %29 : vector<8x1x2xf32> to vector<8x8x2xf32>
    %31 = arith.subf %27, %30 : vector<8x8x2xf32>
    %32 = math.exp %31 : vector<8x8x2xf32>
    %cst_3 = arith.constant dense<0.000000e+00> : vector<8x2xf32>
    %33 = vector.multi_reduction <add>, %32, %cst_3 [1] : vector<8x8x2xf32> to vector<8x2xf32>
    %34 = vector.shape_cast %33 : vector<8x2xf32> to vector<8x1x2xf32>
    %35 = vector.broadcast %34 : vector<8x1x2xf32> to vector<8x8x2xf32>
    %36 = arith.divf %32, %35 : vector<8x8x2xf32>
    %37 = vector.shape_cast %22 : vector<8x2xf32> to vector<1x8x2xf32>
    %38 = vector.broadcast %37 : vector<1x8x2xf32> to vector<8x8x2xf32>
    %39 = arith.mulf %36, %38 : vector<8x8x2xf32>
    %cst_4 = arith.constant dense<0.000000e+00> : vector<8x2xf32>
    %40 = vector.multi_reduction <add>, %39, %cst_4 [1] : vector<8x8x2xf32> to vector<8x2xf32>
    %41 = vector.broadcast %3 : f32 to vector<8x2xf32>
    %42 = arith.mulf %40, %41 : vector<8x2xf32>
    %43 = vector.broadcast %7 : f32 to vector<8x2xf32>
    %44 = arith.addf %42, %43 : vector<8x2xf32>
    %c0_5 = arith.constant 0 : index
    %c0_6 = arith.constant 0 : index
    %45 = vector.load %arg2[%c0_5, %c0_6] : memref<8x2xf32, #tpu.memory_space<vmem>>, vector<8x2xf32>
    tpu.vector_store %arg2[%c0_5, %c0_6], %44 {strides = array<i32>} : memref<8x2xf32, #tpu.memory_space<vmem>>, vector<8x2xf32>,
    return
  }
}

</mosaic_0001>

<bundles_post_ra>
// kernel: tpu_custom_call.1
= control target key start
LH: loop header
LB: loop body
LE: loop exit
PB: predicated region body
PF: predicated region fallthrough
CT: control target
= control target key end

     0   :  { %7 = vsyncpa [#allocation3], 0  ;;  %s611_s0 = inlined_call_operand.vmem [shape: f32[8], index: 0, kind: input, shape index: {}]   ;;  %s612_s1 = inlined_call_operand.vmem [shape: f32[8,2], index: 1, kind: input, shape index: {}]   ;;  %s613_s2 = inlined_call_operand.vmem [shape: f32[8,2], index: 2, kind: output, shape index: {}]  }
   0x1   :  { %s14_s11 = sshll.u32 %s611_s0, 4  ;;  %s15_s11 = int_to_ptr.vmem [resolvable:$true] %s14_s11 }
   0x2   :  { %s448_s12 = scalar_lea.vmem %s15_s11, 16  ;;  %p453_p1 = scmp.lt.s32.totalorder %s15_s11, %s15_s11 }
   0x3   :  { %p449_p0 = scmp.ne.s32.totalorder %s15_s11, %s448_s12  ;;  %p454_p2 = scmp.lt.s32.totalorder %s448_s12, %s448_s12 }
   0x5   :  { %p455_p3 = por %p454_p2, %p453_p1 }
   0x7   :  { %p456_p4 = pnand %p455_p3, %p449_p0 }
   0x9   :  { %459 = shalt.err (!%p456_p4)
}
   0xa   :  { %s462_s13 = smov [#allocation2]  }
   0xb   :  { %17 = dma.vmem_to_smem %s15_s11, 16, %s462_s13, [#allocation3]  }
   0xc   :  { %460 = dma.done.wait [#allocation3], 16  }
   0xd   :  { %461 = vsyncadd [#allocation3], 4294967280 }
   0xe   :  { %23 = sfence }
   0xf   :  { %s24_s14 = sld [smem:[#allocation2]]  ;;  %s407_s15 = sld [smem:[#allocation2 + $0x1]]  ;;  %v50_v0 = vlaneseq  ;;  %v463_v1 = vmov 1966171168   ;;  %v485_v4 = vld [vmem:[%s612_s1] sm:$0xff]  ;;  %vm143_vm0 = vcmask 15360  }
  0x10   :  { %s410_s16 = sld [smem:[#allocation2 + $0x4]]  ;;  %v48_v2 = vunpack.c.l.s4 %v463_v1  ;;  %s411_s0 = sld [smem:[#allocation2 + $0x5]]  ;;  %vm386_vm1 = vcmask 1041409   ;;  %vm388_vm2 = vcmask 1042434   ;;  %vm390_vm3 = vcmask 1043459  }
  0x11   :  { %v51_v3 = vshrl.u32 %v50_v0, 7  ;;  %s559_s1 = sld [smem:[#allocation2 + $0x2]]  ;;  %s563_s19 = sld [smem:[#allocation2 + $0x6]]  ;;  %vm392_vm4 = vcmask 1044484   ;;  %vm394_vm5 = vcmask 1045509   ;;  %vm396_vm6 = vcmask 1046534  }
  0x12   :  { %v49_v5 = vunpack.c.0.s8 %v48_v2  ;;  %s409_s20 = sld [smem:[#allocation2 + $0x3]]  ;;  %s413_s21 = sld [smem:[#allocation2 + $0x7]]  ;;  %vm398_vm7 = vcmask 1047559  }
  0x13   :  { %v97_v16 = vsub.s32 0, %v51_v3 }
  0x14   :  { %v52_v9 = vsub.s32 %v49_v5, %v51_v3 }
  0x15   :  { %v33_v6 = vstv %s24_s14  ;;  %v37_v8 = vstv %s407_s15 }
  0x16   :  { %v34_v7 = vmul.f32 %v33_v6, %v485_v4  ;;  %v35_v10 = vstv %s410_s16  ;;  %v38_v12 = vmul.f32 %v37_v8, %v485_v4  ;;  %v39_v13 = vstv %s411_s0 }
  0x18   :  { %v36_v11 = vadd.f32 %v35_v10, %v34_v7  ;;  %v40_v20 = vadd.f32 %v39_v13, %v38_v12 }
  0x1a   :  { %v46_v14 = vcombine.high %v36_v11, %v36_v11  ;;  %v53_v15 = vrot.slane %v36_v11, %v52_v9 }
  0x1c   :  { %v60_v17 = vrot.slane %v46_v14, %v52_v9  ;;  %v61_v18 = vcombine.high %v53_v15, %v53_v15  ;;  %v69_v19 = vrot.slane %v53_v15, %v52_v9 }
  0x1e   :  { %v62_v21 = vcombine.high %v60_v17, %v60_v17  ;;  %v76_v22 = vrot.slane %v60_v17, %v52_v9  ;;  %v83_v23 = vrot.slane %v61_v18, %v52_v9  ;;  %v91_v24 = vcombine.high %v69_v19, %v69_v19 }
  0x1f   :  { %v98_v25 = vrot.slane %v69_v19, %v97_v16 }
  0x20   :  { %v90_v26 = vrot.slane %v62_v21, %v52_v9  ;;  %v92_v27 = vcombine.high %v76_v22, %v76_v22  ;;  %v93_v28 = vcombine.high %v83_v23, %v83_v23  ;;  %v102_v29 = vrot.slane %v83_v23, %v97_v16 }
  0x21   :  { %v106_v30 = vrot.slane %v91_v24, %v97_v16  ;;  %v114_v31 = vrot.slane %v76_v22, %v97_v16  ;;  %v489_v32 = vmul.f32 %v98_v25, %v40_v20 }
  0x22   :  { %v94_v33 = vcombine.high %v90_v26, %v90_v26  ;;  %v110_v34 = vrot.slane %v93_v28, %v97_v16  ;;  %v118_v35 = vrot.slane %v90_v26, %v97_v16  ;;  %v122_v36 = vrot.slane %v92_v27, %v97_v16 }
  0x23   :  { %v491_v37 = vmul.f32 %v102_v29, %v40_v20  ;;  %v493_v38 = vmul.f32 %v106_v30, %v40_v20  ;;  %v495_v39 = vmul.f32 %v114_v31, %v40_v20  ;;  %v144_v40 = vsel %vm143_vm0, %v489_v32, -inf }
  0x24   :  { %v126_v41 = vrot.slane %v94_v33, %v97_v16  ;;  %v499_v42 = vmul.f32 %v110_v34, %v40_v20  ;;  %v501_v43 = vmul.f32 %v118_v35, %v40_v20  ;;  %v503_v44 = vmul.f32 %v122_v36, %v40_v20 }
  0x25   :  { %v145_v45 = vrot.slane %v144_v40, 4  ;;  %v151_v46 = vsel %vm143_vm0, %v491_v37, -inf  ;;  %v158_v47 = vsel %vm143_vm0, %v493_v38, -inf  ;;  %v172_v48 = vsel %vm143_vm0, %v495_v39, -inf }
  0x26   :  { %v511_v49 = vmul.f32 %v126_v41, %v40_v20  ;;  %v152_v50 = vrot.slane %v151_v46, 4  ;;  %v159_v51 = vrot.slane %v158_v47, 4  ;;  %v165_v52 = vsel %vm143_vm0, %v499_v42, -inf }
  0x27   :  { %v146_v53 = vmax.f32 %v144_v40, %v145_v45  ;;  %v166_v54 = vrot.slane %v165_v52, 4  ;;  %v173_v55 = vrot.slane %v172_v48, 4  ;;  %v179_v56 = vsel %vm143_vm0, %v501_v43, -inf }
  0x28   :  { %v153_v57 = vmax.f32 %v151_v46, %v152_v50  ;;  %v160_v58 = vmax.f32 %v158_v47, %v159_v51  ;;  %v180_v59 = vrot.slane %v179_v56, 4  ;;  %v186_v60 = vsel %vm143_vm0, %v503_v44, -inf }
  0x29   :  { %v147_v61 = vrot.slane %v146_v53, 2  ;;  %v167_v62 = vmax.f32 %v165_v52, %v166_v54  ;;  %v174_v63 = vmax.f32 %v172_v48, %v173_v55  ;;  %v187_v0 = vrot.slane %v186_v60, 4 }
  0x2a   :  { %v154_v1 = vrot.slane %v153_v57, 2  ;;  %v161_v2 = vrot.slane %v160_v58, 2  ;;  %v181_v3 = vmax.f32 %v179_v56, %v180_v59  ;;  %v193_v5 = vsel %vm143_vm0, %v511_v49, -inf }
  0x2b   :  { %v148_v6 = vmax.f32 %v146_v53, %v147_v61  ;;  %v168_v7 = vrot.slane %v167_v62, 2  ;;  %v175_v8 = vrot.slane %v174_v63, 2  ;;  %v188_v9 = vmax.f32 %v186_v60, %v187_v0 }
  0x2c   :  { %v155_v10 = vmax.f32 %v153_v57, %v154_v1  ;;  %v162_v11 = vmax.f32 %v160_v58, %v161_v2  ;;  %v182_v12 = vrot.slane %v181_v3, 2  ;;  %v194_v13 = vrot.slane %v193_v5, 4 }
  0x2d   :  { %v149_v14 = vrot.slane %v148_v6, 1  ;;  %v169_v15 = vmax.f32 %v167_v62, %v168_v7  ;;  %v176_v16 = vmax.f32 %v174_v63, %v175_v8  ;;  %v189_v17 = vrot.slane %v188_v9, 2 }
  0x2e   :  { %v156_v18 = vrot.slane %v155_v10, 1  ;;  %v163_v19 = vrot.slane %v162_v11, 1  ;;  %v183_v20 = vmax.f32 %v181_v3, %v182_v12  ;;  %v195_v21 = vmax.f32 %v193_v5, %v194_v13 }
  0x2f   :  { %v150_v22 = vmax.f32 %v148_v6, %v149_v14  ;;  %v170_v23 = vrot.slane %v169_v15, 1  ;;  %v177_v24 = vrot.slane %v176_v16, 1  ;;  %v190_v25 = vmax.f32 %v188_v9, %v189_v17 }
  0x30   :  { %v157_v26 = vmax.f32 %v155_v10, %v156_v18  ;;  %v164_v27 = vmax.f32 %v162_v11, %v163_v19  ;;  %v184_v28 = vrot.slane %v183_v20, 1  ;;  %v196_v29 = vrot.slane %v195_v21, 2 }
  0x31   :  { %v171_v30 = vmax.f32 %v169_v15, %v170_v23  ;;  %v178_v31 = vmax.f32 %v176_v16, %v177_v24  ;;  %v191_v33 = vrot.slane %v190_v25, 1  ;;  %v200_v34 = vsub.f32 %v489_v32, %v150_v22 }
  0x32   :  { %v185_v35 = vmax.f32 %v183_v20, %v184_v28  ;;  %v197_v36 = vmax.f32 %v195_v21, %v196_v29  ;;  %v201_v40 = vsub.f32 %v491_v37, %v157_v26  ;;  %v202_v41 = vsub.f32 %v493_v38, %v164_v27 }
  0x33   :  { %v192_v45 = vmax.f32 %v190_v25, %v191_v33  ;;  %v203_v46 = vsub.f32 %v499_v42, %v171_v30  ;;  %v204_v47 = vsub.f32 %v495_v39, %v178_v31  ;;  %v208_v48 = vmul.f32 1.442695, %v200_v34 }
  0x34   :  { %v198_v50 = vrot.slane %v197_v36, 1  ;;  %v205_v51 = vsub.f32 %v501_v43, %v185_v35  ;;  %v210_v52 = vmul.f32 1.442695, %v201_v40  ;;  %v212_v53 = vmul.f32 1.442695, %v202_v41 }
  0x35   :  { %v206_v54 = vsub.f32 %v503_v44, %v192_v45  ;;  %416 = vpow2.f32 %v208_v48  ;;  %v214_v32 = vmul.f32 1.442695, %v203_v46  ;;  %v216_v55 = vmul.f32 1.442695, %v204_v47 }
  0x36   :  { %v199_v56 = vmax.f32 %v197_v36, %v198_v50  ;;  %418 = vpow2.f32 %v210_v52  ;;  %v218_v37 = vmul.f32 1.442695, %v205_v51 }
  0x37   :  { %420 = vpow2.f32 %v212_v53  ;;  %v220_v38 = vmul.f32 1.442695, %v206_v54 }
  0x38   :  { %v207_v42 = vsub.f32 %v511_v49, %v199_v56  ;;  %422 = vpow2.f32 %v214_v32 }
  0x39   :  { %424 = vpow2.f32 %v216_v55  ;;  %v41_v55 = vstv %s559_s1 }
  0x3a   :  { %426 = vpow2.f32 %v218_v37  ;;  %v222_v39 = vmul.f32 1.442695, %v207_v42 }
  0x3b   :  { %428 = vpow2.f32 %v220_v38 }
  0x3c   :  { %430 = vpow2.f32 %v222_v39 }
  0x3f   :  { %v529_v43 = vpop.eup %416 }
  0x40   :  { %v531_v57 = vpop.eup %418  ;;  %v224_v44 = vsel %vm143_vm0, %v529_v43, 0.0 }
  0x41   :  { %v535_v58 = vpop.eup %420  ;;  %v225_v59 = vrot.slane %v224_v44, 4  ;;  %v231_v60 = vsel %vm143_vm0, %v531_v57, 0.0 }
  0x42   :  { %v539_v49 = vpop.eup %422  ;;  %v232_v61 = vrot.slane %v231_v60, 4  ;;  %v238_v62 = vsel %vm143_vm0, %v535_v58, 0.0 }
  0x43   :  { %v543_v63 = vpop.eup %424  ;;  %v226_v0 = vadd.f32 %v225_v59, %v224_v44  ;;  %v239_v1 = vrot.slane %v238_v62, 4  ;;  %v245_v2 = vsel %vm143_vm0, %v539_v49, 0.0  ;;  %v42_v44 = vmul.f32 %v41_v55, %v485_v4 }
  0x44   :  { %v547_v3 = vpop.eup %426  ;;  %v233_v5 = vadd.f32 %v232_v61, %v231_v60  ;;  %v246_v6 = vrot.slane %v245_v2, 4  ;;  %v252_v7 = vsel %vm143_vm0, %v543_v63, 0.0  ;;  %v43_v60 = vstv %s563_s19 }
  0x45   :  { %v551_v8 = vpop.eup %428  ;;  %v227_v9 = vrot.slane %v226_v0, 2  ;;  %v240_v10 = vadd.f32 %v239_v1, %v238_v62  ;;  %v253_v11 = vrot.slane %v252_v7, 4  ;;  %v259_v12 = vsel %vm143_vm0, %v547_v3, 0.0 }
  0x46   :  { %v555_v13 = vpop.eup %430  ;;  %v234_v14 = vrot.slane %v233_v5, 2  ;;  %v247_v15 = vadd.f32 %v246_v6, %v245_v2  ;;  %v260_v16 = vrot.slane %v259_v12, 4  ;;  %v266_v17 = vsel %vm143_vm0, %v551_v8, 0.0 }
  0x47   :  { %v228_v18 = vadd.f32 %v227_v9, %v226_v0  ;;  %v241_v19 = vrot.slane %v240_v10, 2  ;;  %v254_v20 = vadd.f32 %v253_v11, %v252_v7  ;;  %v267_v21 = vrot.slane %v266_v17, 4 }
  0x48   :  { %v235_v22 = vadd.f32 %v234_v14, %v233_v5  ;;  %v248_v23 = vrot.slane %v247_v15, 2  ;;  %v261_v24 = vadd.f32 %v260_v16, %v259_v12  ;;  %v273_v25 = vsel %vm143_vm0, %v555_v13, 0.0 }
  0x49   :  { %v229_v26 = vrot.slane %v228_v18, 1  ;;  %v242_v27 = vadd.f32 %v241_v19, %v240_v10  ;;  %v255_v28 = vrot.slane %v254_v20, 2  ;;  %v268_v29 = vadd.f32 %v267_v21, %v266_v17 }
  0x4a   :  { %v236_v30 = vrot.slane %v235_v22, 1  ;;  %v249_v31 = vadd.f32 %v248_v23, %v247_v15  ;;  %v262_v33 = vrot.slane %v261_v24, 2  ;;  %v274_v34 = vrot.slane %v273_v25, 4 }
  0x4b   :  { %v230_v35 = vadd.f32 %v229_v26, %v228_v18  ;;  %v243_v36 = vrot.slane %v242_v27, 1  ;;  %v256_v40 = vadd.f32 %v255_v28, %v254_v20  ;;  %v269_v41 = vrot.slane %v268_v29, 2 }
  0x4c   :  { %v237_v45 = vadd.f32 %v236_v30, %v235_v22  ;;  %v250_v46 = vrot.slane %v249_v31, 1  ;;  %v263_v47 = vadd.f32 %v262_v33, %v261_v24  ;;  %v275_v48 = vadd.f32 %v274_v34, %v273_v25 }
  0x4d   :  { %v244_v50 = vadd.f32 %v243_v36, %v242_v27  ;;  %v257_v51 = vrot.slane %v256_v40, 1  ;;  %v270_v52 = vadd.f32 %v269_v41, %v268_v29  ;;  %432 = vrcp.f32 %v230_v35 }
  0x4e   :  { %v251_v53 = vadd.f32 %v250_v46, %v249_v31  ;;  %v264_v54 = vrot.slane %v263_v47, 1  ;;  %v276_v32 = vrot.slane %v275_v48, 2  ;;  %434 = vrcp.f32 %v237_v45 }
  0x4f   :  { %v258_v56 = vadd.f32 %v257_v51, %v256_v40  ;;  %v271_v37 = vrot.slane %v270_v52, 1  ;;  %436 = vrcp.f32 %v244_v50  ;;  %v44_v62 = vadd.f32 %v43_v60, %v42_v44 }
  0x50   :  { %v265_v38 = vadd.f32 %v264_v54, %v263_v47  ;;  %v277_v42 = vadd.f32 %v276_v32, %v275_v48  ;;  %438 = vrcp.f32 %v251_v53  ;;  %v572_v14 = vstv %s409_s20 }
  0x51   :  { %v272_v39 = vadd.f32 %v271_v37, %v270_v52  ;;  %440 = vrcp.f32 %v258_v56 }
  0x52   :  { %v278_v59 = vrot.slane %v277_v42, 1  ;;  %442 = vrcp.f32 %v265_v38 }
  0x53   :  { %444 = vrcp.f32 %v272_v39 }
  0x54   :  { %v279_v61 = vadd.f32 %v278_v59, %v277_v42 }
  0x56   :  { %446 = vrcp.f32 %v279_v61 }
  0x57   :  { %v433_v0 = vpop.eup %432 }
  0x58   :  { %v435_v1 = vpop.eup %434  ;;  %v281_v2 = vmul.f32 %v433_v0, %v529_v43  ;;  %v576_v43 = vstv %s413_s21 }
  0x59   :  { %v437_v5 = vpop.eup %436  ;;  %v283_v6 = vmul.f32 %v435_v1, %v531_v57 }
  0x5a   :  { %v439_v7 = vpop.eup %438  ;;  %v285_v9 = vmul.f32 %v437_v5, %v535_v58  ;;  %v296_v4 = vmul.f32 %v281_v2, %v44_v62 }
  0x5b   :  { %v441_v10 = vpop.eup %440  ;;  %v287_v11 = vmul.f32 %v439_v7, %v539_v49  ;;  %v297_v12 = vmul.f32 %v283_v6, %v44_v62 }
  0x5c   :  { %v443_v15 = vpop.eup %442  ;;  %v289_v16 = vmul.f32 %v441_v10, %v543_v63  ;;  %v298_v17 = vmul.f32 %v285_v9, %v44_v62  ;;  %v304_v18 = vsel %vm143_vm0, %v296_v4, 0.0 }
  0x5d   :  { %v445_v19 = vpop.eup %444  ;;  %v291_v57 = vmul.f32 %v443_v15, %v547_v3  ;;  %v299_v20 = vmul.f32 %v287_v11, %v44_v62  ;;  %v305_v58 = vrot.slane %v304_v18, 4  ;;  %v311_v21 = vsel %vm143_vm0, %v297_v12, 0.0 }
  0x5e   :  { %v293_v49 = vmul.f32 %v445_v19, %v551_v8  ;;  %v300_v22 = vmul.f32 %v289_v16, %v44_v62  ;;  %v312_v23 = vrot.slane %v311_v21, 4  ;;  %v318_v24 = vsel %vm143_vm0, %v298_v17, 0.0 }
  0x5f   :  { %v301_v25 = vmul.f32 %v291_v57, %v44_v62  ;;  %v306_v63 = vadd.f32 %v305_v58, %v304_v18  ;;  %v319_v26 = vrot.slane %v318_v24, 4  ;;  %v325_v27 = vsel %vm143_vm0, %v299_v20, 0.0 }
  0x60   :  { %v447_v28 = vpop.eup %446  ;;  %v302_v29 = vmul.f32 %v293_v49, %v44_v62  ;;  %v313_v30 = vadd.f32 %v312_v23, %v311_v21  ;;  %v326_v31 = vrot.slane %v325_v27, 4  ;;  %v332_v3 = vsel %vm143_vm0, %v300_v22, 0.0 }
  0x61   :  { %v295_v33 = vmul.f32 %v447_v28, %v555_v13  ;;  %v307_v34 = vrot.slane %v306_v63, 2  ;;  %v320_v35 = vadd.f32 %v319_v26, %v318_v24  ;;  %v333_v8 = vrot.slane %v332_v3, 4 }
  0x62   :  { %v314_v36 = vrot.slane %v313_v30, 2  ;;  %v327_v40 = vadd.f32 %v326_v31, %v325_v27  ;;  %v339_v41 = vsel %vm143_vm0, %v301_v25, 0.0  ;;  %v346_v45 = vsel %vm143_vm0, %v302_v29, 0.0 }
  0x63   :  { %v303_v46 = vmul.f32 %v295_v33, %v44_v62  ;;  %v308_v47 = vadd.f32 %v307_v34, %v306_v63  ;;  %v321_v48 = vrot.slane %v320_v35, 2  ;;  %v334_v50 = vadd.f32 %v333_v8, %v332_v3 }
  0x64   :  { %v315_v51 = vadd.f32 %v314_v36, %v313_v30  ;;  %v328_v52 = vrot.slane %v327_v40, 2  ;;  %v340_v53 = vrot.slane %v339_v41, 4  ;;  %v347_v54 = vrot.slane %v346_v45, 4 }
  0x65   :  { %v309_v13 = vrot.slane %v308_v47, 1  ;;  %v322_v32 = vadd.f32 %v321_v48, %v320_v35  ;;  %v335_v55 = vrot.slane %v334_v50, 2  ;;  %v353_v56 = vsel %vm143_vm0, %v303_v46, 0.0 }
  0x66   :  { %v316_v37 = vrot.slane %v315_v51, 1  ;;  %v329_v38 = vadd.f32 %v328_v52, %v327_v40  ;;  %v341_v42 = vadd.f32 %v340_v53, %v339_v41  ;;  %v348_v39 = vadd.f32 %v347_v54, %v346_v45 }
  0x67   :  { %v310_v44 = vadd.f32 %v309_v13, %v308_v47  ;;  %v323_v59 = vrot.slane %v322_v32, 1  ;;  %v336_v60 = vadd.f32 %v335_v55, %v334_v50  ;;  %v354_v61 = vrot.slane %v353_v56, 4 }
  0x68   :  { %v317_v62 = vadd.f32 %v316_v37, %v315_v51  ;;  %v330_v0 = vrot.slane %v329_v38, 1  ;;  %v342_v1 = vrot.slane %v341_v42, 2  ;;  %v349_v2 = vrot.slane %v348_v39, 2 }
  0x69   :  { %v324_v5 = vadd.f32 %v323_v59, %v322_v32  ;;  %v337_v6 = vrot.slane %v336_v60, 1  ;;  %v355_v7 = vadd.f32 %v354_v61, %v353_v56  ;;  %v361_v9 = vmul.f32 %v572_v14, %v310_v44 }
  0x6a   :  { %v331_v4 = vadd.f32 %v330_v0, %v329_v38  ;;  %v343_v10 = vadd.f32 %v342_v1, %v341_v42  ;;  %v350_v11 = vadd.f32 %v349_v2, %v348_v39  ;;  %v362_v12 = vmul.f32 %v572_v14, %v317_v62 }
  0x6b   :  { %v338_v15 = vadd.f32 %v337_v6, %v336_v60  ;;  %v356_v16 = vrot.slane %v355_v7, 2  ;;  %v363_v17 = vmul.f32 %v572_v14, %v324_v5  ;;  %v370_v18 = vadd.f32 %v576_v43, %v361_v9 }
  0x6c   :  { %v344_v19 = vrot.slane %v343_v10, 1  ;;  %v351_v57 = vrot.slane %v350_v11, 1  ;;  %v364_v20 = vmul.f32 %v572_v14, %v331_v4  ;;  %v371_v58 = vadd.f32 %v576_v43, %v362_v12 }
  0x6d   :  { %v357_v21 = vadd.f32 %v356_v16, %v355_v7  ;;  %v365_v49 = vmul.f32 %v572_v14, %v338_v15  ;;  %v372_v22 = vadd.f32 %v576_v43, %v363_v17 }
  0x6e   :  { %v345_v23 = vadd.f32 %v344_v19, %v343_v10  ;;  %v352_v24 = vadd.f32 %v351_v57, %v350_v11  ;;  %v373_v25 = vadd.f32 %v576_v43, %v364_v20  ;;  %v387_v63 = vsel %vm386_vm1, %v371_v58, %v370_v18 }
  0x6f   :  { %v358_v26 = vrot.slane %v357_v21, 1  ;;  %v374_v27 = vadd.f32 %v576_v43, %v365_v49  ;;  %v389_v28 = vsel %vm388_vm2, %v372_v22, %v387_v63 }
  0x70   :  { %v366_v29 = vmul.f32 %v572_v14, %v345_v23  ;;  %v367_v30 = vmul.f32 %v572_v14, %v352_v24  ;;  %v391_v31 = vsel %vm390_vm3, %v373_v25, %v389_v28 }
  0x71   :  { %v359_v3 = vadd.f32 %v358_v26, %v357_v21  ;;  %v393_v33 = vsel %vm392_vm4, %v374_v27, %v391_v31 }
  0x72   :  { %v375_v34 = vadd.f32 %v576_v43, %v366_v29  ;;  %v376_v35 = vadd.f32 %v576_v43, %v367_v30 }
  0x73   :  { %v368_v8 = vmul.f32 %v572_v14, %v359_v3 }
  0x74   :  { %v395_v36 = vsel %vm394_vm5, %v375_v34, %v393_v33 }
  0x75   :  { %v377_v40 = vadd.f32 %v576_v43, %v368_v8  ;;  %v397_v41 = vsel %vm396_vm6, %v376_v35, %v395_v36 }
  0x77   :  { %v399_v45 = vsel %vm398_vm7, %v377_v40, %v397_v41 }
  0x78   :  { %401 = vst.msk [vmem:[%s613_s2] sm:$0xff] %vm143_vm0, %v399_v45 }
  0x79   :  { %406 = vsyncpa [#allocation3], 1 }

</bundles_post_ra>
